<compile_context>
chip_gen: v7x
topology: tpu7x:2x2x1
jax: 0.10.0
libtpu: 0.0.40
codegen_flags: <defaults>
</compile_context>

<pallas_src>
import jax
import jax.numpy as jnp
from jax import lax
from jax.experimental import pallas as pl
from jax.experimental.pallas import tpu as pltpu

EPS = 1e-6


def _pick_l_tile(L):
    """Largest convenient query tile that divides L (multiples of 8), else full L."""
    if L <= 256:
        return L
    for t in (256, 128, 64, 32, 16, 8):
        if L % t == 0:
            return t
    return L


def _pick_vmem_limit():
    """Raise the scoped VMEM limit with headroom below physical capacity."""
    try:
        cap = int(pltpu.get_tpu_info().vmem_capacity_bytes)
        return int(min(cap * 3 // 4, 96 * 1024 * 1024))
    except Exception:
        return None  # fall back to compiler default


def _linear_attn_kernel(q_ref, k_ref, v_ref, m_ref, vout_ref, attn_ref,
                        ktv_sc, ksum_sc):
    # q_ref: (1,1,TL,D)  k_ref: (1,1,S,D)  v_ref: (1,1,S,M)  m_ref: (1,1,S,1)
    # vout_ref: (1,1,TL,M)  attn_ref: (1,1,TL,S)
    # ktv_sc: (D,M) bf16, ksum_sc: (1,D) f32  — persist across the L grid axis.
    l_idx = pl.program_id(2)

    q = q_ref[0, 0].astype(jnp.float32)                   # (TL, D)
    k = k_ref[0, 0].astype(jnp.float32)                   # (S, D)
    m = m_ref[0, 0].astype(jnp.float32)                   # (S, 1) lane-free bcast

    # elu(x) + 1 feature map (VPU + EUP exp)
    Q = jnp.where(q > 0, q + 1.0, jnp.exp(q))             # (TL, D)
    K = jnp.where(k > 0, k + 1.0, jnp.exp(k)) * m         # (S, D), key-length masked

    Qb = Q.astype(jnp.bfloat16)                           # bf16 MXU operands
    Kb = K.astype(jnp.bfloat16)
    s_len = k.shape[0]

    # K^T V and sum_s K are independent of the query tile: compute once per
    # (batch, head) on the first L-tile and keep them resident in VMEM scratch.
    @pl.when(l_idx == 0)
    def _():
        vb = v_ref[0, 0].astype(jnp.bfloat16)             # (S, M)
        ktv = lax.dot_general(                            # (D, M) on the MXU
            Kb, vb, (((0,), (0,)), ((), ())),
            preferred_element_type=jnp.float32)
        ktv_sc[...] = ktv.astype(jnp.bfloat16)            # stored as MXU operand dtype
        ksum_sc[...] = jnp.sum(K, axis=0, keepdims=True)  # (1, D) f32

    # attention = Q @ K^T  -> (TL, S)   (MXU, bf16 operands, f32 accumulation)
    attn = lax.dot_general(Qb, Kb, (((1,), (1,)), ((), ())),
                           preferred_element_type=jnp.float32)

    # attention_norm = 1 / sum_s(attn + eps) = 1 / (rowsum + S*eps)
    denom = jnp.sum(attn, axis=1, keepdims=True) + s_len * EPS
    attn_ref[0, 0] = (attn * pl.reciprocal(denom, approx=True)).astype(attn_ref.dtype)

    # Z = 1 / (Q . sum_s K + eps)  -> (TL, 1)
    zden = jnp.sum(Q * ksum_sc[...], axis=1, keepdims=True) + EPS
    z = pl.reciprocal(zden, approx=True)

    # V_out = Z * (Q @ (K^T V))  -> (TL, M)   (MXU)
    vout = jnp.dot(Qb, ktv_sc[...], preferred_element_type=jnp.float32) * z
    vout_ref[0, 0] = vout.astype(vout_ref.dtype)


def linear_attention_w_weight(queries, keys, values, attn_mask, key_length_mask,
                              attn_dtype=jnp.bfloat16):
    """
    queries: (N, L, H, D), keys: (N, S, H, D), values: (N, S, H, M)
    attn_mask: (L, S) — must be all ones (checked only when concrete)
    key_length_mask: (N, S) float (1.0 = valid key, 0.0 = padding)
    returns: V (N, L, H, M) in queries.dtype, attention_out (N, H, L, S) in attn_dtype
    """
    # Static full-mask check; skipped if the mask is a tracer (linear attention
    # requires a full mask by construction).
    try:
        all_ones = bool(jnp.all(attn_mask))
    except Exception:
        all_ones = True
    if not all_ones:
        raise RuntimeError("LinearAttention does not support arbitrary attention masks")

    N, L, H, D = queries.shape
    _, S, _, M = values.shape

    # glue: head-major layout so each kernel tile is a clean (seq, dim) 2-D slab.
    # TODO(synk): plumb the (N, H, seq, dim) layout from the producer to drop these transposes.
    q = jnp.transpose(queries, (0, 2, 1, 3))              # (N, H, L, D)
    k = jnp.transpose(keys, (0, 2, 1, 3))                 # (N, H, S, D)
    v = jnp.transpose(values, (0, 2, 1, 3))               # (N, H, S, M)
    mask = key_length_mask.astype(jnp.float32)[:, None, :, None]   # (N, 1, S, 1)

    TL = _pick_l_tile(L)
    n_l = L // TL
    grid = (N, H, n_l)

    cp_kwargs = dict(dimension_semantics=("parallel", "parallel", "arbitrary"))
    vmem_limit = _pick_vmem_limit()
    if vmem_limit is not None:
        cp_kwargs["vmem_limit_bytes"] = vmem_limit

    out_v, out_attn = pl.pallas_call(
        _linear_attn_kernel,
        out_shape=(
            jax.ShapeDtypeStruct((N, H, L, M), queries.dtype),
            jax.ShapeDtypeStruct((N, H, L, S), attn_dtype),   # bf16: halves writeback
        ),
        grid_spec=pltpu.PrefetchScalarGridSpec(
            num_scalar_prefetch=0,
            grid=grid,
            in_specs=[
                pl.BlockSpec((1, 1, TL, D), lambda n, h, l: (n, h, l, 0)),
                pl.BlockSpec((1, 1, S, D), lambda n, h, l: (n, h, 0, 0)),
                pl.BlockSpec((1, 1, S, M), lambda n, h, l: (n, h, 0, 0)),
                pl.BlockSpec((1, 1, S, 1), lambda n, h, l: (n, 0, 0, 0)),
            ],
            out_specs=[
                pl.BlockSpec((1, 1, TL, M), lambda n, h, l: (n, h, l, 0)),
                pl.BlockSpec((1, 1, TL, S), lambda n, h, l: (n, h, l, 0)),
            ],
            scratch_shapes=[
                pltpu.VMEM((D, M), jnp.bfloat16),  # K^T V, resident across L-tiles
                pltpu.VMEM((1, D), jnp.float32),   # sum_s K
            ],
        ),
        compiler_params=pltpu.CompilerParams(**cp_kwargs),
    )(q, k, v, mask)

    V = jnp.transpose(out_v, (0, 2, 1, 3))                # (N, L, H, M)
    return V, out_attn


def _reference(queries, keys, values, key_length_mask):
    # plain-JAX fp32 reference for validation
    elu1 = lambda x: jnp.where(x > 0, x + 1.0, jnp.exp(x))
    Q = elu1(queries)
    K = elu1(keys) * key_length_mask[:, :, None, None]
    V = values
    KV = jnp.einsum('nshd,nshm->nhmd', K, V)
    Z = 1.0 / (jnp.einsum('nlhd,nhd->nlh', Q, K.sum(axis=1)) + EPS)
    attn = jnp.einsum('nlhd,nshd->nlsh', Q, K)
    attn_norm = 1.0 / jnp.einsum('nlsh->nlh', attn + EPS)
    attn_out = jnp.einsum('nlsh,nlh->nlsh', attn, attn_norm)
    attn_out = jnp.einsum('nlsh->nhls', attn_out)
    Vout = jnp.einsum('nlhd,nhmd,nlh->nlhm', Q, KV, Z)
    return Vout, attn_out


if __name__ == "__main__":
    key = jax.random.PRNGKey(0)
    N, L, S, H, D = 2, 8, 8, 2, 32   # M == D == query_dimensions
    M = D
    kq, kk, kv = jax.random.split(key, 3)
    queries = jax.random.normal(kq, (N, L, H, D), dtype=jnp.float32)
    keys = jax.random.normal(kk, (N, S, H, D), dtype=jnp.float32)
    values = jax.random.normal(kv, (N, S, H, M), dtype=jnp.float32)
    attn_mask = jnp.ones((L, S), dtype=jnp.float32)                 # must be all ones
    key_length_mask = jnp.ones((N, S), dtype=jnp.float32)
    key_length_mask = key_length_mask.at[1, S - 2:].set(0.0)        # exercise key masking

    V, attn_w = linear_attention_w_weight(
        queries, keys, values, attn_mask, key_length_mask)
    jax.block_until_ready((V, attn_w))

    V_ref, attn_expected = _reference(queries, keys, values, key_length_mask)
    # bf16 MXU operands + bf16 attention output + EUP approx reciprocals =>
    # compare against the fp32 reference at relaxed tolerance.
    assert jnp.allclose(V, V_ref, atol=2e-2, rtol=2e-2), "V mismatch"
    assert jnp.allclose(attn_w.astype(jnp.float32), attn_expected,
                        atol=2e-2, rtol=2e-2), "attention weights mismatch"

    print("KERNEL_OK")
</pallas_src>

<mosaic_0001>
module attributes {stable_mosaic.version = 11 : i64} {
  func.func @_linear_attn_kernel(%arg0: i32, %arg1: i32, %arg2: i32, %arg3: memref<1x1x8x32xf32, #tpu.memory_space<vmem>>, %arg4: memref<1x1x8x32xf32, #tpu.memory_space<vmem>>, %arg5: memref<1x1x8x32xf32, #tpu.memory_space<vmem>>, %arg6: memref<1x1x8x1xf32, #tpu.memory_space<vmem>>, %arg7: memref<1x1x8x32xf32, #tpu.memory_space<vmem>>, %arg8: memref<1x1x8x8xbf16, #tpu.memory_space<vmem>>, %arg9: memref<32x32xbf16, #tpu.memory_space<vmem>>, %arg10: memref<1x32xf32, #tpu.memory_space<vmem>>) attributes {dimension_semantics = [#tpu.dimension_semantics<parallel>, #tpu.dimension_semantics<parallel>, #tpu.dimension_semantics<arbitrary>], iteration_bounds = array<i64: 2, 2, 1>, scalar_prefetch = 0 : i64, scratch_operands = 2 : i64, tpu.core_type = #tpu.core_type<tc>, window_params = [{transform_indices = @transform_0, window_bounds = array<i64: 1, 1, 8, 32>}, {transform_indices = @transform_1, window_bounds = array<i64: 1, 1, 8, 32>}, {transform_indices = @transform_2, window_bounds = array<i64: 1, 1, 8, 32>}, {transform_indices = @transform_3, window_bounds = array<i64: 1, 1, 8, 1>}, {transform_indices = @transform_4, window_bounds = array<i64: 1, 1, 8, 32>}, {transform_indices = @transform_5, window_bounds = array<i64: 1, 1, 8, 8>}]} {
    %c0 = arith.constant 0 : index
    %c0_0 = arith.constant 0 : index
    %c0_1 = arith.constant 0 : index
    %c0_2 = arith.constant 0 : index
    %0 = vector.load %arg3[%c0, %c0_0, %c0_1, %c0_2] : memref<1x1x8x32xf32, #tpu.memory_space<vmem>>, vector<1x1x8x32xf32>
    %1 = vector.shape_cast %0 : vector<1x1x8x32xf32> to vector<8x32xf32>
    %c0_3 = arith.constant 0 : index
    %c0_4 = arith.constant 0 : index
    %c0_5 = arith.constant 0 : index
    %c0_6 = arith.constant 0 : index
    %2 = vector.load %arg4[%c0_3, %c0_4, %c0_5, %c0_6] : memref<1x1x8x32xf32, #tpu.memory_space<vmem>>, vector<1x1x8x32xf32>
    %3 = vector.shape_cast %2 : vector<1x1x8x32xf32> to vector<8x32xf32>
    %c0_7 = arith.constant 0 : index
    %c0_8 = arith.constant 0 : index
    %c0_9 = arith.constant 0 : index
    %c0_10 = arith.constant 0 : index
    %4 = vector.load %arg6[%c0_7, %c0_8, %c0_9, %c0_10] : memref<1x1x8x1xf32, #tpu.memory_space<vmem>>, vector<1x1x8x1xf32>
    %5 = vector.shape_cast %4 : vector<1x1x8x1xf32> to vector<8x1xf32>
    %cst = arith.constant 0.000000e+00 : f32
    %6 = vector.broadcast %cst : f32 to vector<8x32xf32>
    %7 = arith.cmpf ogt, %1, %6 : vector<8x32xf32>
    %cst_11 = arith.constant 1.000000e+00 : f32
    %8 = vector.broadcast %cst_11 : f32 to vector<8x32xf32>
    %9 = arith.addf %1, %8 : vector<8x32xf32>
    %10 = math.exp %1 : vector<8x32xf32>
    %11 = arith.select %7, %9, %10 : vector<8x32xi1>, vector<8x32xf32>
    %cst_12 = arith.constant 0.000000e+00 : f32
    %12 = vector.broadcast %cst_12 : f32 to vector<8x32xf32>
    %13 = arith.cmpf ogt, %3, %12 : vector<8x32xf32>
    %cst_13 = arith.constant 1.000000e+00 : f32
    %14 = vector.broadcast %cst_13 : f32 to vector<8x32xf32>
    %15 = arith.addf %3, %14 : vector<8x32xf32>
    %16 = math.exp %3 : vector<8x32xf32>
    %17 = arith.select %13, %15, %16 : vector<8x32xi1>, vector<8x32xf32>
    %18 = vector.broadcast %5 : vector<8x1xf32> to vector<8x32xf32>
    %19 = arith.mulf %17, %18 : vector<8x32xf32>
    %20 = arith.truncf %11 : vector<8x32xf32> to vector<8x32xbf16>
    %21 = arith.truncf %19 : vector<8x32xf32> to vector<8x32xbf16>
    %c0_i32 = arith.constant 0 : i32
    %22 = arith.cmpi eq, %arg2, %c0_i32 : i32
    %23 = arith.extui %22 : i1 to i32
    %c0_i32_14 = arith.constant 0 : i32
    %24 = arith.cmpi ne, %23, %c0_i32_14 : i32
    scf.if %24 {
      %c0_33 = arith.constant 0 : index
      %c0_34 = arith.constant 0 : index
      %c0_35 = arith.constant 0 : index
      %c0_36 = arith.constant 0 : index
      %52 = vector.load %arg5[%c0_33, %c0_34, %c0_35, %c0_36] : memref<1x1x8x32xf32, #tpu.memory_space<vmem>>, vector<1x1x8x32xf32>
      %53 = vector.shape_cast %52 : vector<1x1x8x32xf32> to vector<8x32xf32>
      %54 = arith.truncf %53 : vector<8x32xf32> to vector<8x32xbf16>
      %cst_37 = arith.constant dense<0.000000e+00> : vector<32x32xf32>
      %55 = tpu.matmul %21, %54, %cst_37 {dimension_numbers = #tpu.dot_dimension_numbers<[0], [0], [1], [1], [0, 1, 1, 1], [], []>} : vector<8x32xbf16>, vector<8x32xbf16>, vector<32x32xf32> -> vector<32x32xf32>
      %56 = arith.truncf %55 : vector<32x32xf32> to vector<32x32xbf16>
      %c0_38 = arith.constant 0 : index
      %c0_39 = arith.constant 0 : index
      %57 = vector.load %arg9[%c0_38, %c0_39] : memref<32x32xbf16, #tpu.memory_space<vmem>>, vector<32x32xbf16>
      tpu.vector_store %arg9[%c0_38, %c0_39], %56 {strides = array<i32>} : memref<32x32xbf16, #tpu.memory_space<vmem>>, vector<32x32xbf16>,
      %cst_40 = arith.constant dense<0.000000e+00> : vector<32xf32>
      %58 = vector.multi_reduction <add>, %19, %cst_40 [0] : vector<8x32xf32> to vector<32xf32>
      %59 = vector.shape_cast %58 : vector<32xf32> to vector<1x32xf32>
      %c0_41 = arith.constant 0 : index
      %c0_42 = arith.constant 0 : index
      %60 = vector.load %arg10[%c0_41, %c0_42] : memref<1x32xf32, #tpu.memory_space<vmem>>, vector<1x32xf32>
      tpu.vector_store %arg10[%c0_41, %c0_42], %59 {strides = array<i32>} : memref<1x32xf32, #tpu.memory_space<vmem>>, vector<1x32xf32>,
    } else {
    }
    %cst_15 = arith.constant dense<0.000000e+00> : vector<8x8xf32>
    %25 = tpu.matmul %20, %21, %cst_15 {dimension_numbers = #tpu.dot_dimension_numbers<[1], [1], [0], [0], [0, 0, 1, 0], [], []>} : vector<8x32xbf16>, vector<8x32xbf16>, vector<8x8xf32> -> vector<8x8xf32>
    %cst_16 = arith.constant dense<0.000000e+00> : vector<8xf32>
    %26 = vector.multi_reduction <add>, %25, %cst_16 [1] : vector<8x8xf32> to vector<8xf32>
    %27 = vector.shape_cast %26 : vector<8xf32> to vector<8x1xf32>
    %cst_17 = arith.constant 8.000000e-06 : f32
    %28 = vector.broadcast %cst_17 : f32 to vector<8x1xf32>
    %29 = arith.addf %27, %28 : vector<8x1xf32>
    %30 = tpu.reciprocal %29 {approx = true} : vector<8x1xf32> -> vector<8x1xf32>
    %31 = vector.broadcast %30 : vector<8x1xf32> to vector<8x8xf32>
    %32 = arith.mulf %25, %31 : vector<8x8xf32>
    %33 = arith.truncf %32 : vector<8x8xf32> to vector<8x8xbf16>
    %c0_18 = arith.constant 0 : index
    %c0_19 = arith.constant 0 : index
    %c0_20 = arith.constant 0 : index
    %c0_21 = arith.constant 0 : index
    %34 = vector.load %arg8[%c0_18, %c0_19, %c0_20, %c0_21] : memref<1x1x8x8xbf16, #tpu.memory_space<vmem>>, vector<1x1x8x8xbf16>
    %35 = vector.shape_cast %34 : vector<1x1x8x8xbf16> to vector<8x8xbf16>
    %36 = vector.shape_cast %33 : vector<8x8xbf16> to vector<1x1x8x8xbf16>
    tpu.vector_store %arg8[%c0_18, %c0_19, %c0_20, %c0_21], %36 {strides = array<i32>} : memref<1x1x8x8xbf16, #tpu.memory_space<vmem>>, vector<1x1x8x8xbf16>,
    %c0_22 = arith.constant 0 : index
    %c0_23 = arith.constant 0 : index
    %37 = vector.load %arg10[%c0_22, %c0_23] : memref<1x32xf32, #tpu.memory_space<vmem>>, vector<1x32xf32>
    %38 = vector.broadcast %37 : vector<1x32xf32> to vector<8x32xf32>
    %39 = arith.mulf %11, %38 : vector<8x32xf32>
    %cst_24 = arith.constant dense<0.000000e+00> : vector<8xf32>
    %40 = vector.multi_reduction <add>, %39, %cst_24 [1] : vector<8x32xf32> to vector<8xf32>
    %41 = vector.shape_cast %40 : vector<8xf32> to vector<8x1xf32>
    %cst_25 = arith.constant 9.99999997E-7 : f32
    %42 = vector.broadcast %cst_25 : f32 to vector<8x1xf32>
    %43 = arith.addf %41, %42 : vector<8x1xf32>
    %44 = tpu.reciprocal %43 {approx = true} : vector<8x1xf32> -> vector<8x1xf32>
    %c0_26 = arith.constant 0 : index
    %c0_27 = arith.constant 0 : index
    %45 = vector.load %arg9[%c0_26, %c0_27] : memref<32x32xbf16, #tpu.memory_space<vmem>>, vector<32x32xbf16>
    %cst_28 = arith.constant dense<0.000000e+00> : vector<8x32xf32>
    %46 = tpu.matmul %20, %45, %cst_28 {dimension_numbers = #tpu.dot_dimension_numbers<[1], [0], [0], [1], [0, 0, 1, 1], [], []>} : vector<8x32xbf16>, vector<32x32xbf16>, vector<8x32xf32> -> vector<8x32xf32>
    %47 = vector.broadcast %44 : vector<8x1xf32> to vector<8x32xf32>
    %48 = arith.mulf %46, %47 : vector<8x32xf32>
    %c0_29 = arith.constant 0 : index
    %c0_30 = arith.constant 0 : index
    %c0_31 = arith.constant 0 : index
    %c0_32 = arith.constant 0 : index
    %49 = vector.load %arg7[%c0_29, %c0_30, %c0_31, %c0_32] : memref<1x1x8x32xf32, #tpu.memory_space<vmem>>, vector<1x1x8x32xf32>
    %50 = vector.shape_cast %49 : vector<1x1x8x32xf32> to vector<8x32xf32>
    %51 = vector.shape_cast %48 : vector<8x32xf32> to vector<1x1x8x32xf32>
    tpu.vector_store %arg7[%c0_29, %c0_30, %c0_31, %c0_32], %51 {strides = array<i32>} : memref<1x1x8x32xf32, #tpu.memory_space<vmem>>, vector<1x1x8x32xf32>,
    return
  }
  func.func @transform_0(%arg0: i32, %arg1: i32, %arg2: i32) -> (i32, i32, i32, i32) {
    %c0_i32 = arith.constant 0 : i32
    %c0_i32_0 = arith.constant 0 : i32
    return %arg0, %arg1, %arg2, %c0_i32 : i32, i32, i32, i32
  }
  func.func @transform_1(%arg0: i32, %arg1: i32, %arg2: i32) -> (i32, i32, i32, i32) {
    %c0_i32 = arith.constant 0 : i32
    %c0_i32_0 = arith.constant 0 : i32
    %c0_i32_1 = arith.constant 0 : i32
    return %arg0, %arg1, %c0_i32, %c0_i32_0 : i32, i32, i32, i32
  }
  func.func @transform_2(%arg0: i32, %arg1: i32, %arg2: i32) -> (i32, i32, i32, i32) {
    %c0_i32 = arith.constant 0 : i32
    %c0_i32_0 = arith.constant 0 : i32
    %c0_i32_1 = arith.constant 0 : i32
    return %arg0, %arg1, %c0_i32, %c0_i32_0 : i32, i32, i32, i32
  }
  func.func @transform_3(%arg0: i32, %arg1: i32, %arg2: i32) -> (i32, i32, i32, i32) {
    %c0_i32 = arith.constant 0 : i32
    %c0_i32_0 = arith.constant 0 : i32
    %c0_i32_1 = arith.constant 0 : i32
    %c0_i32_2 = arith.constant 0 : i32
    return %arg0, %c0_i32, %c0_i32_0, %c0_i32_1 : i32, i32, i32, i32
  }
  func.func @transform_4(%arg0: i32, %arg1: i32, %arg2: i32) -> (i32, i32, i32, i32) {
    %c0_i32 = arith.constant 0 : i32
    %c0_i32_0 = arith.constant 0 : i32
    return %arg0, %arg1, %arg2, %c0_i32 : i32, i32, i32, i32
  }
  func.func @transform_5(%arg0: i32, %arg1: i32, %arg2: i32) -> (i32, i32, i32, i32) {
    %c0_i32 = arith.constant 0 : i32
    %c0_i32_0 = arith.constant 0 : i32
    return %arg0, %arg1, %arg2, %c0_i32 : i32, i32, i32, i32
  }
}

</mosaic_0001>

<bundles_post_ra>
// kernel: tpu_custom_call.1
= control target key start
LH: loop header
LB: loop body
LE: loop exit
PB: predicated region body
PF: predicated region fallthrough
CT: control target
= control target key end

     0   :  { %s1602_s0 = inlined_call_operand.hbm [shape: f32[2,2,8,32], index: 0, kind: input, shape index: {}]   ;;  %s1603_s1 = inlined_call_operand.hbm [shape: f32[2,2,8,32], index: 1, kind: input, shape index: {}]   ;;  %s1604_s2 = inlined_call_operand.hbm [shape: f32[2,2,8,32], index: 2, kind: input, shape index: {}]   ;;  %s1605_s3 = inlined_call_operand.vmem [shape: f32[2,1,8,1], index: 3, kind: input, shape index: {}]   ;;  %s1606_s4 = inlined_call_operand.hbm [shape: f32[2,2,8,32], index: 4, kind: output, shape index: {0}]   ;;  %s1607_s5 = inlined_call_operand.hbm [shape: bf16[2,2,8,8], index: 5, kind: output, shape index: {1}]  }
   0x1   :  { %1620 = sst [smem:[#allocation25_spill]] %s1603_s1 }
   0x2   :  { %11 = vsyncpa [#allocation5], 0 }
   0x3   :  { %13 = vsyncpa [#allocation5 + $0x1], 0 }
   0x4   :  { %14 = vsyncpa [#allocation8], 0 }
   0x5   :  { %16 = vsyncpa [#allocation8 + $0x1], 0 }
   0x6   :  { %17 = vsyncpa [#allocation6], 0 }
   0x7   :  { %19 = vsyncpa [#allocation6 + $0x1], 0 }
   0x8   :  { %20 = vsyncpa [#allocation12], 0 }
   0x9   :  { %22 = vsyncpa [#allocation12 + $0x1], 0  ;;  %s1266_s18 = smov 0   ;;  %s1268_s19 = smov 0  }
   0xa   :  { %s1270_s20 = smov 0   ;;  %s1272_s21 = smov 0  }
   0xb   :  { %s1274_s22 = smov 0   ;;  %s1276_s23 = smov 0  }
   0xc   :  { %s1278_s24 = smov 0   ;;  %s1280_s25 = smov 0  }
   0xd LB: > { %1621 = sst [smem:[#allocation17_spill]] %s1198_s18  ;;  %s1307_s26 = sadd.s32 4294967295, %s1226_s25   ;;  %s1226_s25 = sphi %s1280_s25, %s28_s25   ;;  %s1222_s24 = sphi %s1278_s24, %s1652_s24   ;;  %s1218_s23 = sphi %s1276_s23, %s1651_s23   ;;  %s1214_s22 = sphi %s1274_s22, %s1650_s22   ;;  %s1210_s21 = sphi %s1272_s21, %s1649_s21   ;;  %s1206_s20 = sphi %s1270_s20, %s1655_s20   ;;  %s1202_s19 = sphi %s1268_s19, %s1654_s19   ;;  %s1198_s18 = sphi %s1266_s18, %s1653_s18  }
   0xe   : > { %1622 = sst [smem:[#allocation18_spill]] %s1218_s23  ;;  %s836_s27 = sadd.s32 4294967294, %s1226_s25  }
   0xf   : > { %1623 = sst [smem:[#allocation19_spill]] %s1222_s24  ;;  %s43_s28 = sadd.s32 1, %s1218_s23 }
  0x10   : > { %1624 = sst [smem:[#allocation20_spill]] %s1226_s25  ;;  %s47_s29 = sadd.s32 1, %s1222_s24 }
  0x11   : > { %p45_p0 = scmp.ge.s32.totalorder %s43_s28, 2  ;;  %s58_s30 = sadd.s32 1, %s1206_s20 }
  0x12   : > { %p65_p1 = scmp.ne.s32.totalorder %s1206_s20, %s1202_s19  ;;  %p66_p2 = scmp.eq.s32.totalorder %s1226_s25, 0 }
  0x13   : > { %s1657_s28 = smov (%p45_p0, %s43_s28), 0  ;;  %s1659_s29 = smov (!%p45_p0, %s47_s29), %s1222_s24 }
  0x14   : > { %1625 = sst [smem:[#allocation21_spill]] %s1657_s28  ;;  %s52_s6 = ssub.s32 %s1218_s23, %s1657_s28 }
  0x15   : > { %p1321_p3 = por %p66_p2, %p65_p1  ;;  %p49_p4 = scmp.ge.s32.totalorder %s1659_s29, 2 }
  0x16   : > { %p71_p5 = scmp.ne.s32.totalorder %s1202_s19, %s1198_s18  ;;  %p72_p6 = scmp.eq.s32.totalorder %s1307_s26, 0 }
  0x17   : > { %p181_p7 = scmp.eq.s32.totalorder %s1307_s26, 3  ;;  %s1661_s29 = smov (%p49_p4, %s1659_s29), 0 }
  0x18   : > { %1627 = sst [smem:[#allocation22_spill]] %s1661_s29  ;;  %p1331_p8 = por %p72_p6, %p71_p5 }
  0x19   : > { %p1335_p9 = por %p181_p7, %p65_p1  ;;  %s51_s10 = ssub.s32 %s1222_s24, %s1661_s29 }
  0x1a   : > { %s1628_s8 = scalar_select %p1331_p8, 1, 0 }
  0x1b   : > { %s1629_s9 = scalar_select %p1335_p9, 1, 0 }
  0x1c   : > { %p187_p10 = scmp.eq.s32.totalorder %s836_s27, 3  ;;  %s53_s11 = sor.u32 %s52_s6, %s51_s10 }
  0x1d   : > { %p56_p11 = scmp.eq.s32.totalorder %s53_s11, 0  ;;  %p924_p13 = scmp.lt.s32.totalorder %s1226_s25, 4 }
  0x1e   : > { %p1341_p12 = por %p187_p10, %p71_p5  ;;  %s1609_s13 = sand.u32 1, %s1206_s20  }
  0x1f   : > { %s1348_s14 = scalar_select %p56_p11, %s1206_s20, %s58_s30  }
  0x20   : > { %s1630_s12 = scalar_select %p1341_p12, 1, 0 }
  0x21   : > { %1632 = sst [smem:[#allocation24_spill]] %s1348_s14  ;;  %s1352_s15 = sshll.u32 %s1609_s13, 3 }
  0x22   : > { %1631 = sst [smem:[#allocation23_spill]] %s1630_s12  ;;  %s840_s16 = sshll.u32 %s1222_s24, 1 }
  0x23   : > { %s247_s17 = sadd.s32 %s1218_s23, %s840_s16  ;;  %p1358_p0 = pnand %p924_p13, %p1321_p3 }
  0x24   : > { %s1362_s6 = sshll.u32 %s247_s17, 7  ;;  %s258_s10 = sand.u32 1, %s1226_s25  }
  0x25   : > { %s1633_s27 = scalar_select %p1358_p0, 1, 0 }
  0x26   : > { %s1634_s1 = sld [smem:[#allocation25_spill]]  ;;  %s262_s16 = scalar_lea.vmem [#allocation7], %s1352_s15 }
  0x27   : > { %s271_s7 = sshll.u32 %s262_s16, 4  ;;  %s1376_s13 = scalar_lea.sflag [#allocation8], %s258_s10  ;;  %s1373_s7 = int_to_ptr.vmem [resolvable:$true] %s271_s7 }
  0x28   : > { %p1382_p4 = pneg %p1358_p0 }
  0x2c   : > { %s1369_s30 = scalar_lea.hbm %s1634_s1, %s1362_s6  ;;  %s1007_s16 = scalar_lea.hbm %s1634_s1, 512 }
  0x2d   : > { %s1002_s17 = scalar_lea.hbm %s1369_s30, 128  ;;  %p1008_p7 = scmp.lt.u32.totalorder %s1369_s30, %s1634_s1 }
  0x2e   : > { %p1003_p3 = scmp.ne.s32.totalorder %s1369_s30, %s1002_s17  ;;  %p1009_p10 = scmp.lt.u32.totalorder %s1007_s16, %s1002_s17 }
  0x2f   : > { %p1011_p13 = scmp.lt.u32.totalorder %s1002_s17, %s1369_s30 }
  0x30   : > { %p1005_p5 = pnand %p1382_p4, %p1003_p3  ;;  %p1010_p11 = por %p1009_p10, %p1008_p7 }
  0x32   : > { %p1006_p6 = pneg %p1005_p5  ;;  %p1012_p1 = por %p1011_p13, %p1010_p11 }
  0x34   : > { %p1013_p2 = pnand %p1012_p1, %p1006_p6 }
  0x36   : > { %1016 = shalt.err (!%p1013_p2)
}
  0x37   : > { %s1017_s10 = scalar_lea.vmem %s1373_s7, 128  ;;  %s1228_s29 = smov [#allocation7]  }
  0x38   : > { %p1018_p3 = scmp.ne.s32.totalorder %s1373_s7, %s1017_s10  ;;  %s1022_s11 = sshll.u32 %s1228_s29, 4  ;;  %s1023_s11 = int_to_ptr.vmem [resolvable:$false] %s1022_s11 }
  0x39   : > { %s1024_s23 = scalar_lea.vmem %s1023_s11, 256  ;;  %p1025_p9 = scmp.lt.s32.totalorder %s1373_s7, %s1023_s11 }
  0x3a   : > { %p1020_p5 = pnand %p1018_p3, %p1382_p4  ;;  %p1026_p8 = scmp.lt.s32.totalorder %s1024_s23, %s1017_s10 }
  0x3c   : > { %p1021_p12 = pneg %p1020_p5  ;;  %p1027_p7 = por %p1026_p8, %p1025_p9 }
  0x3e   : > { %p1028_p10 = pnand %p1027_p7, %p1021_p12 }
  0x40   : > { %1031 = shalt.err (!%p1028_p10)
}
  0x41   : > { %913 = dma.hbm_to_vmem [thread:$0]  (!%p1358_p0), %s1369_s30, 128, %s1373_s7, %s1376_s13  }
  0x42   : > { %p1636_p1 = scmp.lt.s32.totalorder %s1226_s25, 5  ;;  %p1637_p2 = scmp.ge.s32.totalorder %s1226_s25, 1 }
  0x43   : > { %s1418_s10 = scalar_lea.hbm %s1602_s0, %s1362_s6  ;;  %s241_s29 = scalar_lea.vmem [#allocation4], %s1352_s15 }
  0x44   : > { %p1410_p6 = pnand %p1637_p2, %p1636_p1  ;;  %s251_s11 = sshll.u32 %s241_s29, 4  ;;  %s1421_s11 = int_to_ptr.vmem [resolvable:$true] %s251_s11 }
  0x45   : > { %s1427_s23 = scalar_lea.hbm %s1604_s2, %s1362_s6  ;;  %s1639_s1 = sand.u32 1, %s1206_s20  }
  0x46   : > { %s1638_s24 = scalar_select %p1410_p6, 1, 0 }
  0x47   : > { %s238_s14 = scalar_lea.sflag [#allocation5], %s1639_s1  ;;  %s1032_s12 = scalar_lea.hbm %s1418_s10, 128 }
  0x48   : > { %p1033_p8 = scmp.ne.s32.totalorder %s1418_s10, %s1032_s12  ;;  %s1037_s18 = scalar_lea.hbm %s1602_s0, 512 }
  0x49   : > { %p1038_p11 = scmp.lt.u32.totalorder %s1418_s10, %s1602_s0  ;;  %p1039_p13 = scmp.lt.u32.totalorder %s1037_s18, %s1032_s12 }
  0x4a   : > { %p1035_p9 = pnand %p1033_p8, %p1382_p4  ;;  %p1041_p5 = scmp.lt.u32.totalorder %s1032_s12, %s1418_s10 }
  0x4b   : > { %p1040_p3 = por %p1039_p13, %p1038_p11 }
  0x4c   : > { %p1036_p12 = pneg %p1035_p9 }
  0x4d   : > { %p1042_p7 = por %p1041_p5, %p1040_p3 }
  0x4f   : > { %p1043_p10 = pnand %p1042_p7, %p1036_p12 }
  0x51   : > { %1046 = shalt.err (!%p1043_p10)
}
  0x52   : > { %s1047_s1 = scalar_lea.vmem %s1421_s11, 128  ;;  %s1229_s6 = smov [#allocation4]  }
  0x53   : > { %p1048_p1 = scmp.ne.s32.totalorder %s1421_s11, %s1047_s1  ;;  %s1052_s30 = sshll.u32 %s1229_s6, 4  ;;  %s1053_s30 = int_to_ptr.vmem [resolvable:$false] %s1052_s30 }
  0x54   : > { %s1054_s25 = scalar_lea.vmem %s1053_s30, 256  ;;  %p1055_p9 = scmp.lt.s32.totalorder %s1421_s11, %s1053_s30 }
  0x55   : > { %p1050_p2 = pnand %p1048_p1, %p1382_p4  ;;  %p1056_p6 = scmp.lt.s32.totalorder %s1054_s25, %s1047_s1 }
  0x57   : > { %p1051_p8 = pneg %p1050_p2  ;;  %p1057_p11 = por %p1056_p6, %p1055_p9 }
  0x59   : > { %p1058_p13 = pnand %p1057_p11, %p1051_p8 }
  0x5b   : > { %1061 = shalt.err (!%p1058_p13)
}
  0x5c   : > { %910 = dma.hbm_to_vmem [thread:$0]  (!%p1358_p0), %s1418_s10, 128, %s1421_s11, %s238_s14  }
  0x5d   : > { %s282_s18 = scalar_lea.vmem [#allocation9], %s1352_s15  ;;  %s1062_s7 = scalar_lea.hbm %s1427_s23, 128 }
  0x5e   : > { %s291_s12 = sshll.u32 %s282_s18, 4  ;;  %p1063_p12 = scmp.ne.s32.totalorder %s1427_s23, %s1062_s7  ;;  %s292_s12 = int_to_ptr.vmem [resolvable:$true] %s291_s12 }
  0x5f   : > { %s1067_s29 = scalar_lea.hbm %s1604_s2, 512  ;;  %p1068_p5 = scmp.lt.u32.totalorder %s1427_s23, %s1604_s2 }
  0x60   : > { %p1065_p6 = pnand %p1063_p12, %p1382_p4  ;;  %p1069_p7 = scmp.lt.u32.totalorder %s1067_s29, %s1062_s7 }
  0x61   : > { %p1071_p1 = scmp.lt.u32.totalorder %s1062_s7, %s1427_s23 }
  0x62   : > { %p1066_p3 = pneg %p1065_p6  ;;  %p1070_p10 = por %p1069_p7, %p1068_p5 }
  0x64   : > { %p1072_p2 = por %p1071_p1, %p1070_p10 }
  0x66   : > { %p1073_p8 = pnand %p1072_p2, %p1066_p3 }
  0x68   : > { %1076 = shalt.err (!%p1073_p8)
}
  0x69   : > { %s1077_s14 = scalar_lea.vmem %s292_s12, 128  ;;  %s1230_s15 = smov [#allocation9]  }
  0x6a   : > { %p1078_p9 = scmp.ne.s32.totalorder %s292_s12, %s1077_s14  ;;  %s1082_s10 = sshll.u32 %s1230_s15, 4  ;;  %s1083_s10 = int_to_ptr.vmem [resolvable:$false] %s1082_s10 }
  0x6b   : > { %s1084_s11 = scalar_lea.vmem %s1083_s10, 256  ;;  %p1085_p12 = scmp.lt.s32.totalorder %s292_s12, %s1083_s10 }
  0x6c   : > { %p1080_p11 = pnand %p1078_p9, %p1382_p4  ;;  %p1086_p6 = scmp.lt.s32.totalorder %s1084_s11, %s1077_s14 }
  0x6e   : > { %p1081_p13 = pneg %p1080_p11  ;;  %p1087_p0 = por %p1086_p6, %p1085_p12 }
  0x70   : > { %p1088_p5 = pnand %p1087_p0, %p1081_p13 }
  0x72   : > { %1091 = shalt.err (!%p1088_p5)
}
  0x73   : > { %p1640_p7 = scmp.ne.s32.totalorder %s1633_s27, 0  ;;  %p1641_p3 = scmp.ne.s32.totalorder %s1638_s24, 0 }
  0x74   : > { %s1474_s28 = sand.u32 (!%p1641_p3), 1, %s1202_s19   ;;  %p1642_p0 = scmp.ne.s32.totalorder (!%p1641_p3), %s1628_s8, 0 }
  0x75   : > { %916 = dma.hbm_to_vmem [thread:$0]  (!%p1640_p7), %s1427_s23, 128, %s292_s12, %s1376_s13  }
  0x76   : > { %307 = sbr.rel (%p1641_p3) target bundleno = 835 (0x343), region = 36  ;;  %s1477_s30 = sshll.u32 (!%p1641_p3), %s1474_s28, 3 }
  0x77   : > { %s310_s25 = scalar_lea.sflag (!%p1641_p3), [#allocation5], %s1474_s28  ;;  %s313_s18 = scalar_lea.vmem (!%p1641_p3), [#allocation4], %s1477_s30 }
  0x7d   : > { %1181 = dma.done.wait (%p1642_p0), %s310_s25, 128  }
  0x7e   : > { %1183 = vsyncadd (%p1642_p0), %s310_s25, 4294967168  ;;  %s318_s13 = sand.u32 1, %s1307_s26   ;;  %s322_s24 = scalar_lea.vmem [#allocation7], %s1477_s30 }
  0x7f   : > { %s319_s27 = scalar_lea.sflag [#allocation8], %s318_s13 }
  0x80   : > { %1185 = dma.done.wait (%p1642_p0), %s319_s27, 256  }
  0x81   : > { %1187 = vsyncadd (%p1642_p0), %s319_s27, 4294967040  ;;  %p377_p4 = scmp.lt.s32.totalorder %s1214_s22, 1  ;;  %v1231_v0 = vmov 0   ;;  %v1232_v2 = vmov 0.0   ;;  %vm1233_vm0 = vmmov 0   ;;  %s331_s26 = scalar_lea.vmem [#allocation9], %s1477_s30 }
  0x82   : > { %993 = vset.pattern.permute.xlu0 %v1231_v0  ;;  %882 = vmatprep.subr.bf16.mxu1 %v1232_v2  ;;  %v407_v3 = vld [vmem:[%s331_s26] sm:$0xff]  ;;  %v383_v4 = vld [vmem:[%s322_s24] sm:$0xff]  ;;  %vm432_vm1 = vcmask 1043456   ;;  %vm487_vm3 = vcmask 261120   ;;  %vm497_vm5 = vcmask 253952   ;;  %vm425_vm6 = vcmask 64512  }
  0x83   : > { %s378_s23 = scalar_select %p377_p4, %s1214_s22, 1  ;;  %884 = vmatprep.mubr.msk.bf16.mxu1 %vm1233_vm0, %v1232_v2  ;;  %v408_v5 = vpack.c.bf16 %v407_v3, %v407_v3  ;;  %v392_v7 = vmul.f32 1.442695, %v383_v4  ;;  %v382_v8 = vld [vmem:[%s313_s18] sm:$0xff]  ;;  %v391_v10 = vadd.f32 1.0, %v383_v4  ;;  %vm390_vm2 = vcmp.gt.f32.partialorder %v383_v4, 0.0 }
  0x84   : > { %v387_v9 = vmul.f32 1.442695, %v382_v8  ;;  %v386_v15 = vadd.f32 1.0, %v382_v8  ;;  %vm385_vm4 = vcmp.gt.f32.partialorder %v382_v8, 0.0  ;;  %s853_s8 = sshll.u32 %s1474_s28, 2  ;;  %vm554_vm7 = vcmask 60416  }
  0x85   : > { %s854_s12 = sshll.u32 %s378_s23, 3  ;;  %896 = vmatprep.subr.msk.bf16.mxu0 %vm432_vm1, %v408_v5  ;;  %v434_v6 = vsel %vm432_vm1, %v408_v5, 0  ;;  %994 = vpow2.f32 %v392_v7  ;;  %s376_s29 = scalar_lea.vmem [#allocation11], %s853_s8 }
  0x86   : > { %s380_s16 = scalar_lea.vmem %s1605_s3, %s854_s12  ;;  %877 = vmatpush3.bf16.msra.mxu0 %v434_v6  ;;  %996 = vpow2.f32 %v387_v9  ;;  %s862_s1 = sshll.u32 %s1214_s22, 1 }
  0x87   : > { %v384_v1 = vld [vmem:[%s380_s16] sm:$0xff]  ;;  %888 = vmatprep.subr.bf16.mxu0 %v1232_v2  ;;  %s1516_s6 = sadd.s32 %s1210_s21, %s862_s1  ;;  %s651_s15 = sshll.u32 %s376_s29, 4  ;;  %s652_s15 = int_to_ptr.vmem [resolvable:$true] %s651_s15 }
  0x88   : > { %397 = vperm.xlu0 %993, %v384_v1   ;;  %s865_s14 = sshll.u32 %s1516_s6, 6  ;;  %s619_s18 = scalar_lea.sflag [#allocation12], %s1474_s28 }
  0x89   : > { %s1522_s25 = scalar_lea.hbm %s1607_s5, %s865_s14  ;;  %s1092_s13 = scalar_lea.vmem %s652_s15, 64 }
  0x8a   : > { %p1093_p10 = scmp.ne.s32.totalorder %s652_s15, %s1092_s13  ;;  %p1643_p1 = scmp.ne.s32.totalorder %s1629_s9, 0 }
  0x8b   : > { %s1234_s27 = smov [#allocation11]  }
  0x8c   : > { %p1094_p2 = pnand %p1093_p10, %p1643_p1  ;;  %s1096_s24 = sshll.u32 %s1234_s27, 4  ;;  %s1097_s24 = int_to_ptr.vmem [resolvable:$false] %s1096_s24 }
  0x8d   : > { %s1098_s21 = scalar_lea.vmem %s1097_s24, 128  ;;  %p1099_p9 = scmp.lt.s32.totalorder %s652_s15, %s1097_s24 }
  0x8e   : > { %p1095_p8 = pneg %p1094_p2  ;;  %p1100_p11 = scmp.lt.s32.totalorder %s1098_s21, %s1092_s13 }
  0x8f   : > { %v995_v11 = vpop.eup %994 }
  0x90   : > { %v394_v12 = vsel %vm390_vm2, %v391_v10, %v995_v11  ;;  %v997_v16 = vpop.eup %996  ;;  %p1101_p13 = por %p1100_p11, %p1099_p9 }
  0x91   : > { %v389_v22 = vsel %vm385_vm4, %v386_v15, %v997_v16 }
  0x92   : > { %v401_v24 = vpack.c.bf16 %v389_v22, %v389_v22  ;;  %p1102_p12 = pnand %p1101_p13, %p1095_p8 }
 0x107   : > { %v398_v13 = vpop.permute.xlu0 %397 }
 0x108   : > { %v400_v14 = vmul.f32 %v398_v13, %v394_v12 }
 0x10a   : > { %v402_v17 = vpack.c.bf16 %v400_v14, %v400_v14  ;;  %v490_v18 = vsel %vm487_vm3, %v400_v14, 0.0 }
 0x10b   : > { %v491_v19 = vrot.slane %v490_v18, 4 }
 0x10c   : > { %409 = vxpose.xlu0.c.b16.start.end [1/1] (short) (narrow) %v402_v17, 32  ;;  %v504_v20 = vsel %vm487_vm3, %v402_v17, 0 }
 0x10d   : > { %v492_v21 = vadd.f32 %v491_v19, %v490_v18  ;;  %883 = vmatpush3.bf16.xpose.msra.mxu1 %v504_v20 }
 0x10f   : > { %v493_v23 = vrot.slane %v492_v21, 2 }
 0x111   : > { %v494_v25 = vadd.f32 %v493_v23, %v492_v21 }
 0x113   : > { %v495_v26 = vrot.slane %v494_v25, 1 }
 0x114   : > { %885 = vmatmul.mubr.msk.bf16.vlgmr.msra.gmra.mrb[0].mxu1 %vm487_vm3, %v401_v24 }
 0x115   : > { %v496_v27 = vadd.f32 %v495_v26, %v494_v25 }
 0x117   : > { %498 = vst.msk [vmem:[#allocation3] sm:$0x1] %vm497_vm5, %v496_v27 }
 0x11e   : > { %v858_v30 = vld [vmem:[#allocation3] ss:$0 sm:$0xff] }
 0x11f   : > { %v563_v33 = vmul.f32 %v858_v30, %v389_v22 }
 0x121   : > { %v564_v37 = vsel %vm487_vm3, %v563_v33, 0.0 }
 0x172   : > { %v417_v28 = vpop.trf.xlu0 }
 0x173   : > { %878 = vmatprep.mubr.msk.bf16.mxu0 %vm425_vm6, %v417_v28 }
 0x176   : > { %v418_v29 = vpop.trf.xlu0 }
 0x177   : > { %879 = vmatmul.mubr.msk.bf16.vlgmr.msra.gmra.mrb[0].mxu0 %vm425_vm6, %v418_v29 }
 0x178   : > { %892 = vmatprep.mubr.msk.bf16.mxu0 %vm1233_vm0, %v1232_v2 }
 0x1e7   : > { %v540_v31 = vpop.f32.mrb[0].mxu1 }
 0x1e8   : > { %v547_v32 = vsel %vm425_vm6, %v540_v31, 0.0  ;;  %v886_v34 = vpop.f32.mrb[1].mxu1 }
 0x1e9   : > { %548 = vadd.xlane.f32.xlu1 %v547_v32  ;;  %v543_v35 = vpop.f32.mrb[2].mxu1 }
 0x1ea   : > { %v887_v36 = vpop.f32.mrb[3].mxu1 }
 0x1ed   : > { %565 = vadd.xlane.f32.xlu1 %v564_v37 }
 0x24a   : > { %v880_v38 = vpop.f32.mrb[0].mxu0 }
 0x24b   : > { %v470_v39 = vpop.f32.mrb[1].mxu0 }
 0x24c   : > { %v881_v40 = vpop.f32.mrb[2].mxu0 }
 0x24d   : > { %v486_v41 = vpack.c.bf16 %v881_v40, %v880_v38  ;;  %v473_v42 = vpop.f32.mrb[3].mxu0 }
 0x24e   : > { %v485_v43 = vpack.c.bf16 %v473_v42, %v470_v39 }
 0x24f   : > { %489 = vst.msk [vmem:[#allocation2 + $0x8] sm:$0xff] %vm487_vm3, %v486_v41 }
 0x250   : > { %488 = vst.msk [vmem:[#allocation2] sm:$0xff] %vm487_vm3, %v485_v43 }
 0x256   : > { %v570_v45 = vld [vmem:[#allocation2 + $0x8] sm:$0xff] }
 0x257   : > { %v569_v44 = vld [vmem:[#allocation2] sm:$0xff] }
 0x258   : > { %889 = vmatpush3.bf16.msra.mxu0 %v569_v44 }
 0x259   : > { %890 = vmatprep.subr.bf16.mxu0 %v1232_v2 }
 0x25c   : > { %891 = vmatpush3.bf16.msra.mxu0 %v570_v45 }
 0x25f   : > { %893 = vmatmul.mubr.msk.bf16.vlgmr.msra.gmra.mrb[4].mxu0 %vm487_vm3, %v401_v24 }
 0x276   : > { %v549_v46 = vpop.xlane.xlu1 %548 }
 0x277   : > { %v550_v47 = vadd.f32 8e-06, %v549_v46 }
 0x279   : > { %998 = vrcp.f32 %v550_v47 }
 0x283   : > { %v999_v48 = vpop.eup %998 }
 0x284   : > { %v552_v49 = vmul.f32 %v999_v48, %v540_v31 }
 0x286   : > { %v553_v50 = vpack.c.bf16 %v552_v49, %v552_v49 }
 0x288   : > { %555 = vst.msk [vmem:[%s376_s29] sm:$0xf] %vm554_vm7, %v553_v50 }
 0x289   : > { %1105 = shalt.err (!%p1102_p12)
}
 0x28a   : > { %s1106_s22 = scalar_lea.hbm %s1522_s25, 64  ;;  %s1110_s7 = scalar_lea.hbm %s1607_s5, 256 }
 0x28b   : > { %p1107_p6 = scmp.ne.s32.totalorder %s1522_s25, %s1106_s22  ;;  %p1111_p3 = scmp.lt.u32.totalorder %s1522_s25, %s1607_s5 }
 0x28c   : > { %p1112_p0 = scmp.lt.u32.totalorder %s1110_s7, %s1106_s22  ;;  %p1114_p10 = scmp.lt.u32.totalorder %s1106_s22, %s1522_s25 }
 0x28d   : > { %p1108_p5 = pnand %p1107_p6, %p1643_p1 }
 0x28e   : > { %p1113_p4 = por %p1112_p0, %p1111_p3 }
 0x28f   : > { %p1109_p7 = pneg %p1108_p5 }
 0x290   : > { %p1115_p2 = por %p1114_p10, %p1113_p4 }
 0x292   : > { %p1116_p8 = pnand %p1115_p2, %p1109_p7 }
 0x294   : > { %1119 = shalt.err (!%p1116_p8)
}
 0x295   : > { %904 = dma.vmem_to_hbm [thread:$0]  (%p1643_p1), %s652_s15, 64, %s1522_s25, %s619_s18   ;;  %v566_v51 = vpop.xlane.xlu1 %565 }
 0x296   : > { %v567_v52 = vadd.f32 1e-06, %v566_v51  ;;  %s863_s26 = sshll.u32 %s1516_s6, 7  ;;  %s369_s8 = scalar_lea.vmem [#allocation10], %s1477_s30 }
 0x297   : > { %s635_s29 = sshll.u32 %s369_s8, 4  ;;  %s1547_s10 = scalar_lea.hbm %s1606_s4, %s863_s26  ;;  %s1549_s29 = int_to_ptr.vmem [resolvable:$true] %s635_s29 }
 0x298   : > { %1000 = vrcp.f32 %v567_v52  ;;  %s614_s30 = scalar_lea.sflag [#allocation6], %s1474_s28  ;;  %s1120_s6 = scalar_lea.vmem %s1549_s29, 128 }
 0x299   : > { %p1121_p9 = scmp.ne.s32.totalorder %s1549_s29, %s1120_s6  ;;  %s1235_s15 = smov [#allocation10]  }
 0x29a   : > { %s1124_s11 = sshll.u32 %s1235_s15, 4  ;;  %s1125_s11 = int_to_ptr.vmem [resolvable:$false] %s1124_s11 }
 0x29b   : > { %p1122_p11 = pnand %p1121_p9, %p1643_p1  ;;  %s1126_s25 = scalar_lea.vmem %s1125_s11, 256 }
 0x29c   : > { %p1127_p12 = scmp.lt.s32.totalorder %s1549_s29, %s1125_s11  ;;  %p1128_p6 = scmp.lt.s32.totalorder %s1126_s25, %s1120_s6 }
 0x29d   : > { %p1123_p13 = pneg %p1122_p11 }
 0x29e   : > { %p1129_p5 = por %p1128_p6, %p1127_p12 }
 0x2a0   : > { %p1130_p7 = pnand %p1129_p5, %p1123_p13 }
 0x2a2   : > { %v1001_v53 = vpop.eup %1000 }
 0x332   : > { %v605_v54 = vpop.f32.mrb[4].mxu0 }
 0x333   : > { %v611_v55 = vmul.f32 %v1001_v53, %v605_v54  ;;  %v894_v56 = vpop.f32.mrb[5].mxu0 }
 0x334   : > { %v608_v57 = vpop.f32.mrb[6].mxu0 }
 0x335   : > { %v895_v58 = vpop.f32.mrb[7].mxu0  ;;  %612 = vst.msk [vmem:[%s369_s8] sm:$0xff] %vm487_vm3, %v611_v55 }
 0x336   : > { %1133 = shalt.err (!%p1130_p7)
}
 0x337   : > { %s1134_s28 = scalar_lea.hbm %s1547_s10, 128  ;;  %s1138_s27 = scalar_lea.hbm %s1606_s4, 512 }
 0x338   : > { %p1135_p3 = scmp.ne.s32.totalorder %s1547_s10, %s1134_s28  ;;  %p1139_p10 = scmp.lt.u32.totalorder %s1547_s10, %s1606_s4 }
 0x339   : > { %p1140_p2 = scmp.lt.u32.totalorder %s1138_s27, %s1134_s28  ;;  %p1142_p9 = scmp.lt.u32.totalorder %s1134_s28, %s1547_s10 }
 0x33a   : > { %p1136_p0 = pnand %p1135_p3, %p1643_p1 }
 0x33b   : > { %p1141_p8 = por %p1140_p2, %p1139_p10 }
 0x33c   : > { %p1137_p4 = pneg %p1136_p0 }
 0x33d   : > { %p1143_p11 = por %p1142_p9, %p1141_p8 }
 0x33f   : > { %p1144_p13 = pnand %p1143_p11, %p1137_p4 }
 0x341   : > { %1147 = shalt.err (!%p1144_p13)
}
 0x342   : > { %903 = dma.vmem_to_hbm [thread:$0]  (%p1643_p1), %s1549_s29, 128, %s1547_s10, %s614_s30  }
 0x343 PF: > { %s1644_s22 = sld [smem:[#allocation20_spill]]  ;;  %s1645_s23 = sld [smem:[#allocation17_spill]] }
 0x344   : > { %s1646_s12 = sld [smem:[#allocation23_spill]] }
 0x349   : > { %p925_p12 = scmp.ge.s32.totalorder %s1644_s22, 2  ;;  %s663_s7 = sand.u32 1, %s1645_s23  }
 0x34a   : > { %p1647_p6 = scmp.ne.s32.totalorder %s1646_s12, 0  ;;  %s664_s17 = scalar_lea.sflag [#allocation6], %s663_s7 }
 0x34c   : > { %p918_p5 = pnand %p925_p12, %p1647_p6 }
 0x34e   : > { %1189 = dma.done.wait (!%p918_p5), %s664_s17, 128  }
 0x34f   : > { %1191 = vsyncadd (!%p918_p5), %s664_s17, 4294967168  ;;  %s673_s16 = scalar_lea.sflag [#allocation12], %s663_s7 }
 0x350   : > { %1193 = dma.done.wait (!%p918_p5), %s673_s16, 64  }
 0x351   : > { %1195 = vsyncadd (!%p918_p5), %s673_s16, 4294967232  ;;  %s28_s25 = sadd.s32 1, %s1644_s22   ;;  %s1648_s9 = sld [smem:[#allocation24_spill]] }
 0x352   : > { %p25_p7 = scmp.ge.s32.totalorder %s28_s25, 6   ;;  %s1649_s21 = sld [smem:[#allocation18_spill]] }
 0x353   : > { %s1650_s22 = sld [smem:[#allocation19_spill]]  ;;  %s1651_s23 = sld [smem:[#allocation21_spill]] }
 0x354   : > { %s1652_s24 = sld [smem:[#allocation22_spill]]  ;;  %s1653_s18 = smov %s1202_s19 }
 0x355   : > { %s1654_s19 = smov %s1206_s20  ;;  %27 = sbr.rel (!%p25_p7) target bundleno = 13 (0xd), region = 129 }
 0x357   : > { %s1655_s20 = smov %s1648_s9 }
 0x35c   :  { %678 = vsyncpa [#allocation5], 1 }
 0x35d   :  { %680 = vsyncpa [#allocation5 + $0x1], 1 }
 0x35e   :  { %681 = vsyncpa [#allocation8], 1 }
 0x35f   :  { %683 = vsyncpa [#allocation8 + $0x1], 1 }
 0x360   :  { %684 = vsyncpa [#allocation6], 1 }
 0x361   :  { %686 = vsyncpa [#allocation6 + $0x1], 1 }
 0x362   :  { %687 = vsyncpa [#allocation12], 1 }
 0x363   :  { %689 = vsyncpa [#allocation12 + $0x1], 1 }

</bundles_post_ra>
